<compile_context>
chip_gen: v7x
topology: tpu7x:2x2x1
jax: 0.10.0
libtpu: 0.0.40
codegen_flags: <defaults>
</compile_context>

<pallas_src>
import jax
import jax.numpy as jnp
from jax.experimental import pallas as pl
from jax.experimental.pallas import tpu as pltpu


# ----------------------------- fused Pallas kernel --------------------------

def _make_fused_kernel(branch_cfg, n_batch):
    """Build the fused forward kernel.

    branch_cfg: tuple of (fs, h2, k1, nf) per branch (all Python ints).
    Kernel ref order:
      per branch b: xp_b (fs, N*H2, fs*dim), w1_b (fs*dim, nf), b1_b (1, nf),
                    w2_b (fs, nf, 2nf),      b2_b (1, 2nf)
      then:         wfc (2*B, 2nf, out_dim), bfc (1, out_dim), o_ref (N, out_dim)
    """
    n_branches = len(branch_cfg)

    def kernel(*refs):
        o_ref = refs[-1]
        wfc_ref = refs[5 * n_branches]
        bfc_ref = refs[5 * n_branches + 1]

        bfc = bfc_ref[...]
        # Per-sample accumulators for the final Linear (live in vregs).
        out_rows = [bfc for _ in range(n_batch)]

        for b in range(n_branches):
            fs, h2, k1, nf = branch_cfg[b]
            g = 2 * nf
            rows = n_batch * h2
            xp_ref, w1_ref, b1_ref, w2_ref, b2_ref = refs[5 * b: 5 * b + 5]

            w1 = w1_ref[...]
            b1 = b1_ref[...]
            b2 = b2_ref[...]

            # conv1(+ReLU) and conv2 accumulated as `fs` small matmuls over the
            # per-offset conv1 outputs; batch is folded into the rows.
            acc = jnp.zeros((rows, g), jnp.float32)
            for j in range(fs):
                y1 = jnp.dot(xp_ref[j], w1, preferred_element_type=jnp.float32)
                y1 = jnp.maximum(y1 + b1, 0.0)                  # conv1 + ReLU
                acc = acc + jnp.dot(y1, w2_ref[j],
                                    preferred_element_type=jnp.float32)
            y2 = jnp.maximum(acc + b2, 0.0)                     # conv2 + ReLU

            # k-max pooling (k=2) along the H2 positions of each sample,
            # keeping the two winners in their original positional order
            # (matches torch: topk -> sort indices -> gather).
            iota = jax.lax.broadcasted_iota(jnp.int32, (h2, g), 0)  # hoisted
            wf = wfc_ref[2 * b]       # (g, out_dim): FC rows for "first"
            ws = wfc_ref[2 * b + 1]   # (g, out_dim): FC rows for "second"
            for n in range(n_batch):
                y_n = y2[n * h2:(n + 1) * h2, :]                # (h2, g)
                m1 = jnp.max(y_n, axis=0, keepdims=True)
                i1 = jnp.min(jnp.where(y_n == m1, iota, h2),
                             axis=0, keepdims=True)
                # -1.0 sentinel is valid only because ReLU guarantees y >= 0.
                y_rest = jnp.where(iota == i1, -1.0, y_n)
                m2 = jnp.max(y_rest, axis=0, keepdims=True)
                i2 = jnp.min(jnp.where(y_rest == m2, iota, h2),
                             axis=0, keepdims=True)
                first = jnp.where(i1 < i2, m1, m2)              # (1, g)
                second = jnp.where(i1 < i2, m2, m1)             # (1, g)
                # Fold the pooled features straight into the final Linear.
                out_rows[n] = (out_rows[n]
                               + jnp.dot(first, wf,
                                         preferred_element_type=jnp.float32)
                               + jnp.dot(second, ws,
                                         preferred_element_type=jnp.float32))

        for n in range(n_batch):
            o_ref[n:n + 1, :] = out_rows[n]

    return kernel


# ----------------------- one-time parameter preprocessing -------------------

def preprocess_params(params, filter_size, n_filter, seq_len, dim):
    """One-time weight layout transforms (hoisted off the per-forward path)."""
    g = 2 * n_filter
    branch_cfg = []
    branch_weights = []
    for fs, (w1, b1, w2, b2) in zip(filter_size, params["branches"]):
        h1 = (seq_len - fs) // fs + 1
        h2 = (h1 - fs) // fs + 1
        assert h2 >= 2, "k-max pooling with k=2 needs at least 2 positions"
        k1 = fs * dim
        # conv1 as an im2col matmul: w1f[rw*dim + d, o] = w1[o, 0, rw, d]
        w1f = jnp.transpose(w1[:, 0], (1, 2, 0)).reshape(k1, n_filter)
        # conv2 weight per in-window offset j: w2f[j, c, o] = w2[o, c, j, 0]
        w2f = jnp.transpose(w2[:, :, :, 0], (2, 1, 0))
        branch_weights.append((w1f, b1.reshape(1, -1), w2f, b2.reshape(1, -1)))
        branch_cfg.append((fs, h2, k1, n_filter))
    # Permute / pack the FC weight rows into the order the kernel produces its
    # features ([branch, first/second, channel]) instead of torch's flatten
    # order ([branch, channel, first/second]); packed as (2*B, 2nf, out_dim).
    wfc_t = params["Wfc"].T                                   # (fc_in, out_dim)
    parts = []
    for b in range(len(filter_size)):
        for k in range(2):
            idx = jnp.asarray([(b * g + c) * 2 + k for c in range(g)])
            parts.append(wfc_t[idx, :])
    wfc_packed = jnp.stack(parts, axis=0)                     # (2B, 2nf, out)
    bfc = params["bfc"].reshape(1, -1)
    return tuple(branch_cfg), branch_weights, wfc_packed, bfc


# ------------------------------- model forward -------------------------------

def my_text_cnn_forward(x, branch_cfg, branch_weights, wfc_packed, bfc):
    """Fused forward: one pallas_call, everything VMEM-resident."""
    n_batch = x.shape[0]
    out_dim = wfc_packed.shape[-1]

    inputs = []
    for (fs, h2, k1, nf), (w1f, b1, w2f, b2) in zip(branch_cfg, branch_weights):
        # im2col for the stride==kernel conv1, restricted to the h2*fs window
        # positions that conv2 actually consumes, grouped by conv2's in-window
        # offset j:   xp[j, n*h2 + t, :] = window(t*fs + j) of sample n.
        xw = x[:, 0, : h2 * fs * fs, :].reshape(n_batch, h2, fs, k1)
        xp = jnp.transpose(xw, (2, 0, 1, 3)).reshape(fs, n_batch * h2, k1)
        inputs += [xp, w1f, b1, w2f, b2]
    inputs += [wfc_packed, bfc]

    vmem = pl.BlockSpec(memory_space=pltpu.MemorySpace.VMEM)
    # NOTE: for large batch, add a leading "parallel" grid axis over batch
    # chunks (v7x has 2 TensorCores); at N=2 a single grid point is optimal.
    return pl.pallas_call(
        _make_fused_kernel(branch_cfg, n_batch),
        out_shape=jax.ShapeDtypeStruct((n_batch, out_dim), jnp.float32),
        in_specs=[vmem] * len(inputs),
        out_specs=vmem,
    )(*inputs)


# ------------------------------ pure-JAX reference ---------------------------

def reference_forward(x, params, filter_size):
    pooled_list = []
    hp = jax.lax.Precision.HIGHEST
    for fs, (w1, b1, w2, b2) in zip(filter_size, params["branches"]):
        y1 = jax.lax.conv_general_dilated(
            x, w1, window_strides=(fs, fs), padding="VALID",
            dimension_numbers=("NCHW", "OIHW", "NCHW"), precision=hp)
        y1 = jax.nn.relu(y1 + b1[None, :, None, None])
        y2 = jax.lax.conv_general_dilated(
            y1, w2, window_strides=(fs, fs), padding="VALID",
            dimension_numbers=("NCHW", "OIHW", "NCHW"), precision=hp)
        y2 = jax.nn.relu(y2 + b2[None, :, None, None])
        idx = jnp.sort(jnp.argsort(-y2, axis=2)[:, :, :2, :], axis=2)
        pooled_list.append(jnp.take_along_axis(y2, idx, axis=2))
    cat = jnp.concatenate(pooled_list, axis=1)
    flat = cat.reshape(cat.shape[0], -1)
    return jnp.dot(flat, params["Wfc"].T, precision=hp) + params["bfc"]


# ------------------------------------ main -----------------------------------

if __name__ == "__main__":
    # Module hyper-parameters (small, consistent with the forward pass)
    dim = 16          # embedding dim (last axis of x, consumed by conv1 kernel)
    n_filter = 4
    filter_size = (2, 3)
    out_dim = 8
    n_batch = 2
    seq_len = 24      # sequence length

    key = jax.random.PRNGKey(0)
    keys = jax.random.split(key, 2 + 4 * len(filter_size))

    branches = []
    ki = 0
    for fs in filter_size:
        w1 = 0.1 * jax.random.normal(keys[ki], (n_filter, 1, fs, dim), jnp.float32); ki += 1
        b1 = 0.1 * jax.random.normal(keys[ki], (n_filter,), jnp.float32); ki += 1
        w2 = 0.1 * jax.random.normal(keys[ki], (2 * n_filter, n_filter, fs, 1), jnp.float32); ki += 1
        b2 = 0.1 * jax.random.normal(keys[ki], (2 * n_filter,), jnp.float32); ki += 1
        branches.append((w1, b1, w2, b2))
    fc_in = len(filter_size) * (2 * n_filter) * 2
    wfc = 0.1 * jax.random.normal(keys[ki], (out_dim, fc_in), jnp.float32); ki += 1
    bfc = 0.1 * jax.random.normal(keys[ki], (out_dim,), jnp.float32); ki += 1
    params = {"branches": branches, "Wfc": wfc, "bfc": bfc}

    x = jax.random.normal(jax.random.PRNGKey(1), (n_batch, 1, seq_len, dim), jnp.float32)

    # One-time parameter preprocessing (outside the per-forward path).
    branch_cfg, branch_weights, wfc_packed, bfc_p = preprocess_params(
        params, filter_size, n_filter, seq_len, dim)

    out = my_text_cnn_forward(x, branch_cfg, branch_weights, wfc_packed, bfc_p)
    out = jax.block_until_ready(out)
    assert out.shape == (n_batch, out_dim), out.shape

    ref = jax.block_until_ready(reference_forward(x, params, filter_size))
    assert jnp.allclose(out, ref, rtol=2e-2, atol=2e-2), (
        "mismatch vs reference", jnp.max(jnp.abs(out - ref)))

    print("KERNEL_OK")
</pallas_src>

<mosaic_0001>
module attributes {stable_mosaic.version = 11 : i64} {
  func.func @kernel(%arg0: memref<2x12x32xf32, #tpu.memory_space<vmem>>, %arg1: memref<32x4xf32, #tpu.memory_space<vmem>>, %arg2: memref<1x4xf32, #tpu.memory_space<vmem>>, %arg3: memref<2x4x8xf32, #tpu.memory_space<vmem>>, %arg4: memref<1x8xf32, #tpu.memory_space<vmem>>, %arg5: memref<3x4x48xf32, #tpu.memory_space<vmem>>, %arg6: memref<48x4xf32, #tpu.memory_space<vmem>>, %arg7: memref<1x4xf32, #tpu.memory_space<vmem>>, %arg8: memref<3x4x8xf32, #tpu.memory_space<vmem>>, %arg9: memref<1x8xf32, #tpu.memory_space<vmem>>, %arg10: memref<4x8x8xf32, #tpu.memory_space<vmem>>, %arg11: memref<1x8xf32, #tpu.memory_space<vmem>>, %arg12: memref<2x8xf32, #tpu.memory_space<vmem>>) attributes {dimension_semantics = [], scalar_prefetch = 0 : i64, scratch_operands = 0 : i64, tpu.core_type = #tpu.core_type<tc>} {
    %c0 = arith.constant 0 : index
    %c0_0 = arith.constant 0 : index
    %0 = vector.load %arg11[%c0, %c0_0] : memref<1x8xf32, #tpu.memory_space<vmem>>, vector<1x8xf32>
    %c0_1 = arith.constant 0 : index
    %c0_2 = arith.constant 0 : index
    %1 = vector.load %arg1[%c0_1, %c0_2] : memref<32x4xf32, #tpu.memory_space<vmem>>, vector<32x4xf32>
    %c0_3 = arith.constant 0 : index
    %c0_4 = arith.constant 0 : index
    %2 = vector.load %arg2[%c0_3, %c0_4] : memref<1x4xf32, #tpu.memory_space<vmem>>, vector<1x4xf32>
    %c0_5 = arith.constant 0 : index
    %c0_6 = arith.constant 0 : index
    %3 = vector.load %arg4[%c0_5, %c0_6] : memref<1x8xf32, #tpu.memory_space<vmem>>, vector<1x8xf32>
    %cst = arith.constant 0.000000e+00 : f32
    %4 = vector.broadcast %cst : f32 to vector<12x8xf32>
    %c0_7 = arith.constant 0 : index
    %c0_8 = arith.constant 0 : index
    %c0_9 = arith.constant 0 : index
    %5 = vector.load %arg0[%c0_7, %c0_8, %c0_9] : memref<2x12x32xf32, #tpu.memory_space<vmem>>, vector<1x12x32xf32>
    %6 = vector.shape_cast %5 : vector<1x12x32xf32> to vector<12x32xf32>
    %cst_10 = arith.constant dense<0.000000e+00> : vector<12x4xf32>
    %7 = tpu.matmul %6, %1, %cst_10 {dimension_numbers = #tpu.dot_dimension_numbers<[1], [0], [0], [1], [0, 0, 1, 1], [], []>} : vector<12x32xf32>, vector<32x4xf32>, vector<12x4xf32> -> vector<12x4xf32>
    %8 = vector.broadcast %2 : vector<1x4xf32> to vector<12x4xf32>
    %9 = arith.addf %7, %8 : vector<12x4xf32>
    %cst_11 = arith.constant 0.000000e+00 : f32
    %10 = vector.broadcast %cst_11 : f32 to vector<12x4xf32>
    %11 = arith.maximumf %9, %10 : vector<12x4xf32>
    %c0_12 = arith.constant 0 : index
    %c0_13 = arith.constant 0 : index
    %c0_14 = arith.constant 0 : index
    %12 = vector.load %arg3[%c0_12, %c0_13, %c0_14] : memref<2x4x8xf32, #tpu.memory_space<vmem>>, vector<1x4x8xf32>
    %13 = vector.shape_cast %12 : vector<1x4x8xf32> to vector<4x8xf32>
    %cst_15 = arith.constant dense<0.000000e+00> : vector<12x8xf32>
    %14 = tpu.matmul %11, %13, %cst_15 {dimension_numbers = #tpu.dot_dimension_numbers<[1], [0], [0], [1], [0, 0, 1, 1], [], []>} : vector<12x4xf32>, vector<4x8xf32>, vector<12x8xf32> -> vector<12x8xf32>
    %15 = arith.addf %4, %14 : vector<12x8xf32>
    %c1 = arith.constant 1 : index
    %c0_16 = arith.constant 0 : index
    %c0_17 = arith.constant 0 : index
    %16 = vector.load %arg0[%c1, %c0_16, %c0_17] : memref<2x12x32xf32, #tpu.memory_space<vmem>>, vector<1x12x32xf32>
    %17 = vector.shape_cast %16 : vector<1x12x32xf32> to vector<12x32xf32>
    %cst_18 = arith.constant dense<0.000000e+00> : vector<12x4xf32>
    %18 = tpu.matmul %17, %1, %cst_18 {dimension_numbers = #tpu.dot_dimension_numbers<[1], [0], [0], [1], [0, 0, 1, 1], [], []>} : vector<12x32xf32>, vector<32x4xf32>, vector<12x4xf32> -> vector<12x4xf32>
    %19 = vector.broadcast %2 : vector<1x4xf32> to vector<12x4xf32>
    %20 = arith.addf %18, %19 : vector<12x4xf32>
    %cst_19 = arith.constant 0.000000e+00 : f32
    %21 = vector.broadcast %cst_19 : f32 to vector<12x4xf32>
    %22 = arith.maximumf %20, %21 : vector<12x4xf32>
    %c1_20 = arith.constant 1 : index
    %c0_21 = arith.constant 0 : index
    %c0_22 = arith.constant 0 : index
    %23 = vector.load %arg3[%c1_20, %c0_21, %c0_22] : memref<2x4x8xf32, #tpu.memory_space<vmem>>, vector<1x4x8xf32>
    %24 = vector.shape_cast %23 : vector<1x4x8xf32> to vector<4x8xf32>
    %cst_23 = arith.constant dense<0.000000e+00> : vector<12x8xf32>
    %25 = tpu.matmul %22, %24, %cst_23 {dimension_numbers = #tpu.dot_dimension_numbers<[1], [0], [0], [1], [0, 0, 1, 1], [], []>} : vector<12x4xf32>, vector<4x8xf32>, vector<12x8xf32> -> vector<12x8xf32>
    %26 = arith.addf %15, %25 : vector<12x8xf32>
    %27 = vector.broadcast %3 : vector<1x8xf32> to vector<12x8xf32>
    %28 = arith.addf %26, %27 : vector<12x8xf32>
    %cst_24 = arith.constant 0.000000e+00 : f32
    %29 = vector.broadcast %cst_24 : f32 to vector<12x8xf32>
    %30 = arith.maximumf %28, %29 : vector<12x8xf32>
    %31 = tpu.iota {dimensions = array<i32: 0>} : vector<6x8xi32>
    %c0_25 = arith.constant 0 : index
    %c0_26 = arith.constant 0 : index
    %c0_27 = arith.constant 0 : index
    %32 = vector.load %arg10[%c0_25, %c0_26, %c0_27] : memref<4x8x8xf32, #tpu.memory_space<vmem>>, vector<1x8x8xf32>
    %33 = vector.shape_cast %32 : vector<1x8x8xf32> to vector<8x8xf32>
    %c1_28 = arith.constant 1 : index
    %c0_29 = arith.constant 0 : index
    %c0_30 = arith.constant 0 : index
    %34 = vector.load %arg10[%c1_28, %c0_29, %c0_30] : memref<4x8x8xf32, #tpu.memory_space<vmem>>, vector<1x8x8xf32>
    %35 = vector.shape_cast %34 : vector<1x8x8xf32> to vector<8x8xf32>
    %36 = vector.extract_strided_slice %30 {offsets = [0, 0], sizes = [6, 8], strides = [1, 1]} : vector<12x8xf32> to vector<6x8xf32>
    %cst_31 = arith.constant dense<0xFF800000> : vector<8xf32>
    %37 = vector.multi_reduction <maximumf>, %36, %cst_31 [0] : vector<6x8xf32> to vector<8xf32>
    %38 = vector.shape_cast %37 : vector<8xf32> to vector<1x8xf32>
    %39 = vector.broadcast %38 : vector<1x8xf32> to vector<6x8xf32>
    %40 = arith.cmpf oeq, %36, %39 : vector<6x8xf32>
    %c6_i32 = arith.constant 6 : i32
    %41 = vector.broadcast %c6_i32 : i32 to vector<6x8xi32>
    %42 = arith.select %40, %31, %41 : vector<6x8xi1>, vector<6x8xi32>
    %cst_32 = arith.constant dense<2147483647> : vector<8xi32>
    %43 = vector.multi_reduction <minsi>, %42, %cst_32 [0] : vector<6x8xi32> to vector<8xi32>
    %44 = vector.shape_cast %43 : vector<8xi32> to vector<1x8xi32>
    %45 = vector.broadcast %44 : vector<1x8xi32> to vector<6x8xi32>
    %46 = arith.cmpi eq, %31, %45 : vector<6x8xi32>
    %cst_33 = arith.constant -1.000000e+00 : f32
    %47 = vector.broadcast %cst_33 : f32 to vector<6x8xf32>
    %48 = arith.select %46, %47, %36 : vector<6x8xi1>, vector<6x8xf32>
    %cst_34 = arith.constant dense<0xFF800000> : vector<8xf32>
    %49 = vector.multi_reduction <maximumf>, %48, %cst_34 [0] : vector<6x8xf32> to vector<8xf32>
    %50 = vector.shape_cast %49 : vector<8xf32> to vector<1x8xf32>
    %51 = vector.broadcast %50 : vector<1x8xf32> to vector<6x8xf32>
    %52 = arith.cmpf oeq, %48, %51 : vector<6x8xf32>
    %c6_i32_35 = arith.constant 6 : i32
    %53 = vector.broadcast %c6_i32_35 : i32 to vector<6x8xi32>
    %54 = arith.select %52, %31, %53 : vector<6x8xi1>, vector<6x8xi32>
    %cst_36 = arith.constant dense<2147483647> : vector<8xi32>
    %55 = vector.multi_reduction <minsi>, %54, %cst_36 [0] : vector<6x8xi32> to vector<8xi32>
    %56 = vector.shape_cast %55 : vector<8xi32> to vector<1x8xi32>
    %57 = arith.cmpi slt, %44, %56 : vector<1x8xi32>
    %58 = arith.select %57, %38, %50 : vector<1x8xi1>, vector<1x8xf32>
    %59 = arith.cmpi slt, %44, %56 : vector<1x8xi32>
    %60 = arith.select %59, %50, %38 : vector<1x8xi1>, vector<1x8xf32>
    %cst_37 = arith.constant dense<0.000000e+00> : vector<1x8xf32>
    %61 = tpu.matmul %58, %33, %cst_37 {dimension_numbers = #tpu.dot_dimension_numbers<[1], [0], [0], [1], [0, 0, 1, 1], [], []>} : vector<1x8xf32>, vector<8x8xf32>, vector<1x8xf32> -> vector<1x8xf32>
    %62 = arith.addf %0, %61 : vector<1x8xf32>
    %cst_38 = arith.constant dense<0.000000e+00> : vector<1x8xf32>
    %63 = tpu.matmul %60, %35, %cst_38 {dimension_numbers = #tpu.dot_dimension_numbers<[1], [0], [0], [1], [0, 0, 1, 1], [], []>} : vector<1x8xf32>, vector<8x8xf32>, vector<1x8xf32> -> vector<1x8xf32>
    %64 = arith.addf %62, %63 : vector<1x8xf32>
    %65 = vector.extract_strided_slice %30 {offsets = [6, 0], sizes = [6, 8], strides = [1, 1]} : vector<12x8xf32> to vector<6x8xf32>
    %cst_39 = arith.constant dense<0xFF800000> : vector<8xf32>
    %66 = vector.multi_reduction <maximumf>, %65, %cst_39 [0] : vector<6x8xf32> to vector<8xf32>
    %67 = vector.shape_cast %66 : vector<8xf32> to vector<1x8xf32>
    %68 = vector.broadcast %67 : vector<1x8xf32> to vector<6x8xf32>
    %69 = arith.cmpf oeq, %65, %68 : vector<6x8xf32>
    %c6_i32_40 = arith.constant 6 : i32
    %70 = vector.broadcast %c6_i32_40 : i32 to vector<6x8xi32>
    %71 = arith.select %69, %31, %70 : vector<6x8xi1>, vector<6x8xi32>
    %cst_41 = arith.constant dense<2147483647> : vector<8xi32>
    %72 = vector.multi_reduction <minsi>, %71, %cst_41 [0] : vector<6x8xi32> to vector<8xi32>
    %73 = vector.shape_cast %72 : vector<8xi32> to vector<1x8xi32>
    %74 = vector.broadcast %73 : vector<1x8xi32> to vector<6x8xi32>
    %75 = arith.cmpi eq, %31, %74 : vector<6x8xi32>
    %cst_42 = arith.constant -1.000000e+00 : f32
    %76 = vector.broadcast %cst_42 : f32 to vector<6x8xf32>
    %77 = arith.select %75, %76, %65 : vector<6x8xi1>, vector<6x8xf32>
    %cst_43 = arith.constant dense<0xFF800000> : vector<8xf32>
    %78 = vector.multi_reduction <maximumf>, %77, %cst_43 [0] : vector<6x8xf32> to vector<8xf32>
    %79 = vector.shape_cast %78 : vector<8xf32> to vector<1x8xf32>
    %80 = vector.broadcast %79 : vector<1x8xf32> to vector<6x8xf32>
    %81 = arith.cmpf oeq, %77, %80 : vector<6x8xf32>
    %c6_i32_44 = arith.constant 6 : i32
    %82 = vector.broadcast %c6_i32_44 : i32 to vector<6x8xi32>
    %83 = arith.select %81, %31, %82 : vector<6x8xi1>, vector<6x8xi32>
    %cst_45 = arith.constant dense<2147483647> : vector<8xi32>
    %84 = vector.multi_reduction <minsi>, %83, %cst_45 [0] : vector<6x8xi32> to vector<8xi32>
    %85 = vector.shape_cast %84 : vector<8xi32> to vector<1x8xi32>
    %86 = arith.cmpi slt, %73, %85 : vector<1x8xi32>
    %87 = arith.select %86, %67, %79 : vector<1x8xi1>, vector<1x8xf32>
    %88 = arith.cmpi slt, %73, %85 : vector<1x8xi32>
    %89 = arith.select %88, %79, %67 : vector<1x8xi1>, vector<1x8xf32>
    %cst_46 = arith.constant dense<0.000000e+00> : vector<1x8xf32>
    %90 = tpu.matmul %87, %33, %cst_46 {dimension_numbers = #tpu.dot_dimension_numbers<[1], [0], [0], [1], [0, 0, 1, 1], [], []>} : vector<1x8xf32>, vector<8x8xf32>, vector<1x8xf32> -> vector<1x8xf32>
    %91 = arith.addf %0, %90 : vector<1x8xf32>
    %cst_47 = arith.constant dense<0.000000e+00> : vector<1x8xf32>
    %92 = tpu.matmul %89, %35, %cst_47 {dimension_numbers = #tpu.dot_dimension_numbers<[1], [0], [0], [1], [0, 0, 1, 1], [], []>} : vector<1x8xf32>, vector<8x8xf32>, vector<1x8xf32> -> vector<1x8xf32>
    %93 = arith.addf %91, %92 : vector<1x8xf32>
    %c0_48 = arith.constant 0 : index
    %c0_49 = arith.constant 0 : index
    %94 = vector.load %arg6[%c0_48, %c0_49] : memref<48x4xf32, #tpu.memory_space<vmem>>, vector<48x4xf32>
    %c0_50 = arith.constant 0 : index
    %c0_51 = arith.constant 0 : index
    %95 = vector.load %arg7[%c0_50, %c0_51] : memref<1x4xf32, #tpu.memory_space<vmem>>, vector<1x4xf32>
    %c0_52 = arith.constant 0 : index
    %c0_53 = arith.constant 0 : index
    %96 = vector.load %arg9[%c0_52, %c0_53] : memref<1x8xf32, #tpu.memory_space<vmem>>, vector<1x8xf32>
    %cst_54 = arith.constant 0.000000e+00 : f32
    %97 = vector.broadcast %cst_54 : f32 to vector<4x8xf32>
    %c0_55 = arith.constant 0 : index
    %c0_56 = arith.constant 0 : index
    %c0_57 = arith.constant 0 : index
    %98 = vector.load %arg5[%c0_55, %c0_56, %c0_57] : memref<3x4x48xf32, #tpu.memory_space<vmem>>, vector<1x4x48xf32>
    %99 = vector.shape_cast %98 : vector<1x4x48xf32> to vector<4x48xf32>
    %cst_58 = arith.constant dense<0.000000e+00> : vector<4x4xf32>
    %100 = tpu.matmul %99, %94, %cst_58 {dimension_numbers = #tpu.dot_dimension_numbers<[1], [0], [0], [1], [0, 0, 1, 1], [], []>} : vector<4x48xf32>, vector<48x4xf32>, vector<4x4xf32> -> vector<4x4xf32>
    %101 = vector.broadcast %95 : vector<1x4xf32> to vector<4x4xf32>
    %102 = arith.addf %100, %101 : vector<4x4xf32>
    %cst_59 = arith.constant 0.000000e+00 : f32
    %103 = vector.broadcast %cst_59 : f32 to vector<4x4xf32>
    %104 = arith.maximumf %102, %103 : vector<4x4xf32>
    %c0_60 = arith.constant 0 : index
    %c0_61 = arith.constant 0 : index
    %c0_62 = arith.constant 0 : index
    %105 = vector.load %arg8[%c0_60, %c0_61, %c0_62] : memref<3x4x8xf32, #tpu.memory_space<vmem>>, vector<1x4x8xf32>
    %106 = vector.shape_cast %105 : vector<1x4x8xf32> to vector<4x8xf32>
    %cst_63 = arith.constant dense<0.000000e+00> : vector<4x8xf32>
    %107 = tpu.matmul %104, %106, %cst_63 {dimension_numbers = #tpu.dot_dimension_numbers<[1], [0], [0], [1], [0, 0, 1, 1], [], []>} : vector<4x4xf32>, vector<4x8xf32>, vector<4x8xf32> -> vector<4x8xf32>
    %108 = arith.addf %97, %107 : vector<4x8xf32>
    %c1_64 = arith.constant 1 : index
    %c0_65 = arith.constant 0 : index
    %c0_66 = arith.constant 0 : index
    %109 = vector.load %arg5[%c1_64, %c0_65, %c0_66] : memref<3x4x48xf32, #tpu.memory_space<vmem>>, vector<1x4x48xf32>
    %110 = vector.shape_cast %109 : vector<1x4x48xf32> to vector<4x48xf32>
    %cst_67 = arith.constant dense<0.000000e+00> : vector<4x4xf32>
    %111 = tpu.matmul %110, %94, %cst_67 {dimension_numbers = #tpu.dot_dimension_numbers<[1], [0], [0], [1], [0, 0, 1, 1], [], []>} : vector<4x48xf32>, vector<48x4xf32>, vector<4x4xf32> -> vector<4x4xf32>
    %112 = vector.broadcast %95 : vector<1x4xf32> to vector<4x4xf32>
    %113 = arith.addf %111, %112 : vector<4x4xf32>
    %cst_68 = arith.constant 0.000000e+00 : f32
    %114 = vector.broadcast %cst_68 : f32 to vector<4x4xf32>
    %115 = arith.maximumf %113, %114 : vector<4x4xf32>
    %c1_69 = arith.constant 1 : index
    %c0_70 = arith.constant 0 : index
    %c0_71 = arith.constant 0 : index
    %116 = vector.load %arg8[%c1_69, %c0_70, %c0_71] : memref<3x4x8xf32, #tpu.memory_space<vmem>>, vector<1x4x8xf32>
    %117 = vector.shape_cast %116 : vector<1x4x8xf32> to vector<4x8xf32>
    %cst_72 = arith.constant dense<0.000000e+00> : vector<4x8xf32>
    %118 = tpu.matmul %115, %117, %cst_72 {dimension_numbers = #tpu.dot_dimension_numbers<[1], [0], [0], [1], [0, 0, 1, 1], [], []>} : vector<4x4xf32>, vector<4x8xf32>, vector<4x8xf32> -> vector<4x8xf32>
    %119 = arith.addf %108, %118 : vector<4x8xf32>
    %c2 = arith.constant 2 : index
    %c0_73 = arith.constant 0 : index
    %c0_74 = arith.constant 0 : index
    %120 = vector.load %arg5[%c2, %c0_73, %c0_74] : memref<3x4x48xf32, #tpu.memory_space<vmem>>, vector<1x4x48xf32>
    %121 = vector.shape_cast %120 : vector<1x4x48xf32> to vector<4x48xf32>
    %cst_75 = arith.constant dense<0.000000e+00> : vector<4x4xf32>
    %122 = tpu.matmul %121, %94, %cst_75 {dimension_numbers = #tpu.dot_dimension_numbers<[1], [0], [0], [1], [0, 0, 1, 1], [], []>} : vector<4x48xf32>, vector<48x4xf32>, vector<4x4xf32> -> vector<4x4xf32>
    %123 = vector.broadcast %95 : vector<1x4xf32> to vector<4x4xf32>
    %124 = arith.addf %122, %123 : vector<4x4xf32>
    %cst_76 = arith.constant 0.000000e+00 : f32
    %125 = vector.broadcast %cst_76 : f32 to vector<4x4xf32>
    %126 = arith.maximumf %124, %125 : vector<4x4xf32>
    %c2_77 = arith.constant 2 : index
    %c0_78 = arith.constant 0 : index
    %c0_79 = arith.constant 0 : index
    %127 = vector.load %arg8[%c2_77, %c0_78, %c0_79] : memref<3x4x8xf32, #tpu.memory_space<vmem>>, vector<1x4x8xf32>
    %128 = vector.shape_cast %127 : vector<1x4x8xf32> to vector<4x8xf32>
    %cst_80 = arith.constant dense<0.000000e+00> : vector<4x8xf32>
    %129 = tpu.matmul %126, %128, %cst_80 {dimension_numbers = #tpu.dot_dimension_numbers<[1], [0], [0], [1], [0, 0, 1, 1], [], []>} : vector<4x4xf32>, vector<4x8xf32>, vector<4x8xf32> -> vector<4x8xf32>
    %130 = arith.addf %119, %129 : vector<4x8xf32>
    %131 = vector.broadcast %96 : vector<1x8xf32> to vector<4x8xf32>
    %132 = arith.addf %130, %131 : vector<4x8xf32>
    %cst_81 = arith.constant 0.000000e+00 : f32
    %133 = vector.broadcast %cst_81 : f32 to vector<4x8xf32>
    %134 = arith.maximumf %132, %133 : vector<4x8xf32>
    %135 = tpu.iota {dimensions = array<i32: 0>} : vector<2x8xi32>
    %c2_82 = arith.constant 2 : index
    %c0_83 = arith.constant 0 : index
    %c0_84 = arith.constant 0 : index
    %136 = vector.load %arg10[%c2_82, %c0_83, %c0_84] : memref<4x8x8xf32, #tpu.memory_space<vmem>>, vector<1x8x8xf32>
    %137 = vector.shape_cast %136 : vector<1x8x8xf32> to vector<8x8xf32>
    %c3 = arith.constant 3 : index
    %c0_85 = arith.constant 0 : index
    %c0_86 = arith.constant 0 : index
    %138 = vector.load %arg10[%c3, %c0_85, %c0_86] : memref<4x8x8xf32, #tpu.memory_space<vmem>>, vector<1x8x8xf32>
    %139 = vector.shape_cast %138 : vector<1x8x8xf32> to vector<8x8xf32>
    %140 = vector.extract_strided_slice %134 {offsets = [0, 0], sizes = [2, 8], strides = [1, 1]} : vector<4x8xf32> to vector<2x8xf32>
    %cst_87 = arith.constant dense<0xFF800000> : vector<8xf32>
    %141 = vector.multi_reduction <maximumf>, %140, %cst_87 [0] : vector<2x8xf32> to vector<8xf32>
    %142 = vector.shape_cast %141 : vector<8xf32> to vector<1x8xf32>
    %143 = vector.broadcast %142 : vector<1x8xf32> to vector<2x8xf32>
    %144 = arith.cmpf oeq, %140, %143 : vector<2x8xf32>
    %c2_i32 = arith.constant 2 : i32
    %145 = vector.broadcast %c2_i32 : i32 to vector<2x8xi32>
    %146 = arith.select %144, %135, %145 : vector<2x8xi1>, vector<2x8xi32>
    %cst_88 = arith.constant dense<2147483647> : vector<8xi32>
    %147 = vector.multi_reduction <minsi>, %146, %cst_88 [0] : vector<2x8xi32> to vector<8xi32>
    %148 = vector.shape_cast %147 : vector<8xi32> to vector<1x8xi32>
    %149 = vector.broadcast %148 : vector<1x8xi32> to vector<2x8xi32>
    %150 = arith.cmpi eq, %135, %149 : vector<2x8xi32>
    %cst_89 = arith.constant -1.000000e+00 : f32
    %151 = vector.broadcast %cst_89 : f32 to vector<2x8xf32>
    %152 = arith.select %150, %151, %140 : vector<2x8xi1>, vector<2x8xf32>
    %cst_90 = arith.constant dense<0xFF800000> : vector<8xf32>
    %153 = vector.multi_reduction <maximumf>, %152, %cst_90 [0] : vector<2x8xf32> to vector<8xf32>
    %154 = vector.shape_cast %153 : vector<8xf32> to vector<1x8xf32>
    %155 = vector.broadcast %154 : vector<1x8xf32> to vector<2x8xf32>
    %156 = arith.cmpf oeq, %152, %155 : vector<2x8xf32>
    %c2_i32_91 = arith.constant 2 : i32
    %157 = vector.broadcast %c2_i32_91 : i32 to vector<2x8xi32>
    %158 = arith.select %156, %135, %157 : vector<2x8xi1>, vector<2x8xi32>
    %cst_92 = arith.constant dense<2147483647> : vector<8xi32>
    %159 = vector.multi_reduction <minsi>, %158, %cst_92 [0] : vector<2x8xi32> to vector<8xi32>
    %160 = vector.shape_cast %159 : vector<8xi32> to vector<1x8xi32>
    %161 = arith.cmpi slt, %148, %160 : vector<1x8xi32>
    %162 = arith.select %161, %142, %154 : vector<1x8xi1>, vector<1x8xf32>
    %163 = arith.cmpi slt, %148, %160 : vector<1x8xi32>
    %164 = arith.select %163, %154, %142 : vector<1x8xi1>, vector<1x8xf32>
    %cst_93 = arith.constant dense<0.000000e+00> : vector<1x8xf32>
    %165 = tpu.matmul %162, %137, %cst_93 {dimension_numbers = #tpu.dot_dimension_numbers<[1], [0], [0], [1], [0, 0, 1, 1], [], []>} : vector<1x8xf32>, vector<8x8xf32>, vector<1x8xf32> -> vector<1x8xf32>
    %166 = arith.addf %64, %165 : vector<1x8xf32>
    %cst_94 = arith.constant dense<0.000000e+00> : vector<1x8xf32>
    %167 = tpu.matmul %164, %139, %cst_94 {dimension_numbers = #tpu.dot_dimension_numbers<[1], [0], [0], [1], [0, 0, 1, 1], [], []>} : vector<1x8xf32>, vector<8x8xf32>, vector<1x8xf32> -> vector<1x8xf32>
    %168 = arith.addf %166, %167 : vector<1x8xf32>
    %169 = vector.extract_strided_slice %134 {offsets = [2, 0], sizes = [2, 8], strides = [1, 1]} : vector<4x8xf32> to vector<2x8xf32>
    %cst_95 = arith.constant dense<0xFF800000> : vector<8xf32>
    %170 = vector.multi_reduction <maximumf>, %169, %cst_95 [0] : vector<2x8xf32> to vector<8xf32>
    %171 = vector.shape_cast %170 : vector<8xf32> to vector<1x8xf32>
    %172 = vector.broadcast %171 : vector<1x8xf32> to vector<2x8xf32>
    %173 = arith.cmpf oeq, %169, %172 : vector<2x8xf32>
    %c2_i32_96 = arith.constant 2 : i32
    %174 = vector.broadcast %c2_i32_96 : i32 to vector<2x8xi32>
    %175 = arith.select %173, %135, %174 : vector<2x8xi1>, vector<2x8xi32>
    %cst_97 = arith.constant dense<2147483647> : vector<8xi32>
    %176 = vector.multi_reduction <minsi>, %175, %cst_97 [0] : vector<2x8xi32> to vector<8xi32>
    %177 = vector.shape_cast %176 : vector<8xi32> to vector<1x8xi32>
    %178 = vector.broadcast %177 : vector<1x8xi32> to vector<2x8xi32>
    %179 = arith.cmpi eq, %135, %178 : vector<2x8xi32>
    %cst_98 = arith.constant -1.000000e+00 : f32
    %180 = vector.broadcast %cst_98 : f32 to vector<2x8xf32>
    %181 = arith.select %179, %180, %169 : vector<2x8xi1>, vector<2x8xf32>
    %cst_99 = arith.constant dense<0xFF800000> : vector<8xf32>
    %182 = vector.multi_reduction <maximumf>, %181, %cst_99 [0] : vector<2x8xf32> to vector<8xf32>
    %183 = vector.shape_cast %182 : vector<8xf32> to vector<1x8xf32>
    %184 = vector.broadcast %183 : vector<1x8xf32> to vector<2x8xf32>
    %185 = arith.cmpf oeq, %181, %184 : vector<2x8xf32>
    %c2_i32_100 = arith.constant 2 : i32
    %186 = vector.broadcast %c2_i32_100 : i32 to vector<2x8xi32>
    %187 = arith.select %185, %135, %186 : vector<2x8xi1>, vector<2x8xi32>
    %cst_101 = arith.constant dense<2147483647> : vector<8xi32>
    %188 = vector.multi_reduction <minsi>, %187, %cst_101 [0] : vector<2x8xi32> to vector<8xi32>
    %189 = vector.shape_cast %188 : vector<8xi32> to vector<1x8xi32>
    %190 = arith.cmpi slt, %177, %189 : vector<1x8xi32>
    %191 = arith.select %190, %171, %183 : vector<1x8xi1>, vector<1x8xf32>
    %192 = arith.cmpi slt, %177, %189 : vector<1x8xi32>
    %193 = arith.select %192, %183, %171 : vector<1x8xi1>, vector<1x8xf32>
    %cst_102 = arith.constant dense<0.000000e+00> : vector<1x8xf32>
    %194 = tpu.matmul %191, %137, %cst_102 {dimension_numbers = #tpu.dot_dimension_numbers<[1], [0], [0], [1], [0, 0, 1, 1], [], []>} : vector<1x8xf32>, vector<8x8xf32>, vector<1x8xf32> -> vector<1x8xf32>
    %195 = arith.addf %93, %194 : vector<1x8xf32>
    %cst_103 = arith.constant dense<0.000000e+00> : vector<1x8xf32>
    %196 = tpu.matmul %193, %139, %cst_103 {dimension_numbers = #tpu.dot_dimension_numbers<[1], [0], [0], [1], [0, 0, 1, 1], [], []>} : vector<1x8xf32>, vector<8x8xf32>, vector<1x8xf32> -> vector<1x8xf32>
    %197 = arith.addf %195, %196 : vector<1x8xf32>
    %c0_104 = arith.constant 0 : index
    %c0_105 = arith.constant 0 : index
    %198 = vector.load %arg12[%c0_104, %c0_105] : memref<2x8xf32, #tpu.memory_space<vmem>>, vector<1x8xf32>
    tpu.vector_store %arg12[%c0_104, %c0_105], %168 {strides = array<i32>} : memref<2x8xf32, #tpu.memory_space<vmem>>, vector<1x8xf32>,
    %c1_106 = arith.constant 1 : index
    %c0_107 = arith.constant 0 : index
    %199 = vector.load %arg12[%c1_106, %c0_107] : memref<2x8xf32, #tpu.memory_space<vmem>>, vector<1x8xf32>
    tpu.vector_store %arg12[%c1_106, %c0_107], %197 {strides = array<i32>} : memref<2x8xf32, #tpu.memory_space<vmem>>, vector<1x8xf32>,
    return
  }
}

</mosaic_0001>

<bundles_post_ra>
// kernel: tpu_custom_call.1
= control target key start
LH: loop header
LB: loop body
LE: loop exit
PB: predicated region body
PF: predicated region fallthrough
CT: control target
= control target key end

     0   :  { %vm57_vm0 = vcmask 261120   ;;  %s2330_s0 = inlined_call_operand.vmem [shape: f32[2,12,32], index: 0, kind: input, shape index: {}]   ;;  %s2331_s1 = inlined_call_operand.vmem [shape: f32[32,4], index: 1, kind: input, shape index: {}]   ;;  %s2332_s2 = inlined_call_operand.vmem [shape: f32[1,4], index: 2, kind: input, shape index: {}]   ;;  %s2333_s3 = inlined_call_operand.vmem [shape: f32[2,4,8], index: 3, kind: input, shape index: {}]   ;;  %s2334_s4 = inlined_call_operand.vmem [shape: f32[1,8], index: 4, kind: input, shape index: {}]   ;;  %s2335_s5 = inlined_call_operand.vmem [shape: f32[3,4,48], index: 5, kind: input, shape index: {}]   ;;  %s2336_s6 = inlined_call_operand.vmem [shape: f32[48,4], index: 6, kind: input, shape index: {}]   ;;  %s2337_s7 = inlined_call_operand.vmem [shape: f32[1,4], index: 7, kind: input, shape index: {}]   ;;  %s2338_s8 = inlined_call_operand.vmem [shape: f32[3,4,8], index: 8, kind: input, shape index: {}]   ;;  %s2339_s9 = inlined_call_operand.vmem [shape: f32[1,8], index: 9, kind: input, shape index: {}]   ;;  %s2340_s10 = inlined_call_operand.vmem [shape: f32[4,8,8], index: 10, kind: input, shape index: {}]   ;;  %s2341_s11 = inlined_call_operand.vmem [shape: f32[1,8], index: 11, kind: input, shape index: {}]   ;;  %s2342_s12 = inlined_call_operand.hbm [shape: f32[2,8], index: 12, kind: output, shape index: {}]  }
   0x1   :  { %v43_v0 = vld [vmem:[%s2331_s1] sm:$0xff]  ;;  %v44_v1 = vld [vmem:[%s2331_s1 + $0x8] sm:$0xff]  ;;  %v45_v2 = vld [vmem:[%s2331_s1 + $0x10] sm:$0xff] }
   0x2   :  { %v1943_v3 = vpack.c.bf16 %v44_v1, %v43_v0  ;;  %v46_v4 = vld [vmem:[%s2331_s1 + $0x18] sm:$0xff]  ;;  %v49_v5 = vld [vmem:[%s2330_s0] sm:$0xff]  ;;  %v1712_v6 = vld [vmem:[%s2330_s0 + $0x10] sm:$0xff] }
   0x3   :  { %v1947_v7 = vpack.c.bf16 %v46_v4, %v45_v2  ;;  %1819 = vmatprep.mubr.msk.f32.mxu0 %vm57_vm0, %v49_v5  ;;  %1830 = vmatprep.mubr.msk.f32.mxu1 %vm57_vm0, %v1712_v6 }
   0x4   :  { %17 = vsyncpa [#allocation3], 0  ;;  %1944 = vmatprep.subr.bf16.mxu0 %v1943_v3  ;;  %1952 = vmatprep.subr.bf16.mxu1 %v1943_v3  ;;  %v50_v8 = vld [vmem:[%s2330_s0 + $0x8] sm:$0xf]  ;;  %v1713_v9 = vld [vmem:[%s2330_s0 + $0x18] sm:$0xf]  ;;  %v410_v48 = vlaneseq }
   0x5   :  { %1946 = vmatpush3.bf16.msra.mxu0 %v1943_v3  ;;  %1954 = vmatpush3.bf16.msra.mxu1 %v1943_v3  ;;  %v1716_v10 = vld [vmem:[%s2333_s3 + $0x4] sm:$0xf]  ;;  %vm237_vm1 = vcmask 1043456   ;;  %v141_v11 = vld [vmem:[%s2333_s3] sm:$0xf]  ;;  %vm230_vm2 = vcmask 31744  }
   0x6   :  { %1948 = vmatprep.subr.bf16.mxu0 %v1947_v7  ;;  %1956 = vmatprep.subr.bf16.mxu1 %v1947_v7  ;;  %v1709_v12 = vld [vmem:[%s2332_s2] ss:$0 sm:$0xff]  ;;  %v2030_v26 = vmov 0.0   ;;  %vm2031_vm3 = vmmov 0   ;;  %vm610_vm4 = vcmask 60416   ;;  %vm415_vm5 = vcmask 62464  }
   0x7   :  { %v412_v25 = vld [vmem:[%s2340_s10] sm:$0xff]  ;;  %vm608_vm6 = vcmask 64518   ;;  %vm640_vm7 = vcmask 1041408   ;;  %v2161_v53 = vshrl.u32 %v410_v48, 7  ;;  %s2033_s13 = smov [#allocation2]  }
   0x8   :  { %v1723_v28 = vld [vmem:[%s2334_s4] ss:$0 sm:$0xff]  ;;  %s1701_s14 = sshll.u32 %s2033_s13, 4  ;;  %s1702_s14 = int_to_ptr.vmem [resolvable:$true] %s1701_s14 }
   0x9   :  { %1950 = vmatpush3.bf16.msra.mxu0 %v1947_v7  ;;  %1958 = vmatpush3.bf16.msra.mxu1 %v1947_v7  ;;  %v621_v58 = vrot.slane %v2161_v53, 2  ;;  %s2006_s1 = scalar_lea.vmem %s1702_s14, 32  ;;  %p2011_p1 = scmp.lt.s32.totalorder %s1702_s14, %s1702_s14 }
   0xa   :  { %1833 = vmatprep.subr.msk.mxu1 %vm237_vm1, %v1716_v10  ;;  %1838 = vmatprep.subr.msk.mxu0 %vm237_vm1, %v141_v11  ;;  %p2007_p0 = scmp.ne.s32.totalorder %s1702_s14, %s2006_s1  ;;  %p2012_p2 = scmp.lt.s32.totalorder %s2006_s1, %s2006_s1 }
   0xc   :  { %1820 = vmatmul.mubr.msk.f32.vlgmr.msra.gmra.mrb[0].mxu0 %vm57_vm0, %v50_v8  ;;  %1831 = vmatmul.mubr.msk.f32.vlgmr.msra.gmra.mrb[0].mxu1 %vm57_vm0, %v1713_v9  ;;  %p2013_p3 = por %p2012_p2, %p2011_p1 }
   0xd   :  { %1834 = vmatpush3.msk.msra.mxu1 %vm237_vm1, %v1716_v10  ;;  %1839 = vmatpush3.msk.msra.mxu0 %vm237_vm1, %v141_v11 }
   0xe   :  { %1843 = vmatprep.subr.mxu1 %v2030_v26  ;;  %1853 = vmatprep.subr.mxu0 %v2030_v26  ;;  %p2014_p4 = pnand %p2013_p3, %p2007_p0 }
  0xdf   :  { %v1821_v13 = vpop.f32.mrb[0].mxu0  ;;  %v1832_v14 = vpop.f32.mrb[0].mxu1 }
  0xe0   :  { %v136_v15 = vadd.f32 %v1821_v13, %v1709_v12  ;;  %v223_v16 = vadd.f32 %v1832_v14, %v1709_v12  ;;  %v130_v17 = vpop.f32.mrb[1].mxu0  ;;  %v217_v18 = vpop.f32.mrb[1].mxu1 }
  0xe1   :  { %v131_v19 = vadd.f32 %v1709_v12, %v130_v17  ;;  %v218_v20 = vadd.f32 %v1709_v12, %v217_v18 }
  0xe2   :  { %v140_v23 = vmax.f32 %v136_v15, 0.0  ;;  %v227_v24 = vmax.f32 %v223_v16, 0.0 }
  0xe3   :  { %v139_v21 = vmax.f32 %v131_v19, 0.0  ;;  %v226_v22 = vmax.f32 %v218_v20, 0.0 }
  0xe5   :  { %1835 = vmatprep.mubr.msk.f32.mxu1 %vm230_vm2, %v226_v22  ;;  %1840 = vmatprep.mubr.msk.f32.mxu0 %vm230_vm2, %v139_v21 }
  0xe6   :  { %1836 = vmatmul.mubr.msk.f32.vlgmr.msra.gmra.mrb[2].mxu1 %vm230_vm2, %v227_v24  ;;  %1841 = vmatmul.mubr.msk.f32.vlgmr.msra.gmra.mrb[2].mxu0 %vm230_vm2, %v140_v23 }
  0xe7   :  { %1845 = vmatprep.mubr.msk.f32.mxu1 %vm2031_vm3, %v2030_v26  ;;  %1844 = vmatpush3.msra.mxu1 %v412_v25 }
  0xe8   :  { %1854 = vmatpush3.msra.mxu0 %v412_v25  ;;  %1855 = vmatprep.mubr.msk.f32.mxu0 %vm2031_vm3, %v2030_v26 }
  0xe9   :  { %1858 = vmatprep.subr.mxu0 %v2030_v26  ;;  %1848 = vmatprep.subr.mxu1 %v2030_v26 }
 0x1b9   :  { %v1837_v27 = vpop.f32.mrb[2].mxu1  ;;  %v1842_v29 = vpop.f32.mrb[2].mxu0 }
 0x1ba   :  { %v397_v30 = vadd.f32 %v1842_v29, %v1837_v27  ;;  %v307_v31 = vpop.f32.mrb[3].mxu1  ;;  %v391_v32 = vpop.f32.mrb[3].mxu0 }
 0x1bb   :  { %v392_v33 = vadd.f32 %v391_v32, %v307_v31 }
 0x1bc   :  { %v407_v34 = vadd.f32 %v1723_v28, %v397_v30 }
 0x1bd   :  { %v406_v35 = vadd.f32 %v1723_v28, %v392_v33 }
 0x1be   :  { %v409_v36 = vmax.f32 %v407_v34, 0.0 }
 0x1bf   :  { %v408_v37 = vmax.f32 %v406_v35, 0.0 }
 0x1c0   :  { %v611_v38 = vsel %vm610_vm4, %v409_v36, -inf  ;;  %v642_v39 = vrot.slane %v409_v36, 6 }
 0x1c1   :  { %v416_v40 = vsel %vm415_vm5, %v408_v37, -inf  ;;  %v609_v41 = vsel %vm608_vm6, %v408_v37, -inf  ;;  %v641_v42 = vrot.slane %v408_v37, 6 }
 0x1c2   :  { %v417_v43 = vrot.slane %v416_v40, 4  ;;  %v612_v44 = vmax.f32 %v609_v41, %v611_v38 }
 0x1c3   :  { %v643_v45 = vsel %vm640_vm7, %v641_v42, %v642_v39 }
 0x1c4   :  { %v418_v46 = vmax.f32 %v416_v40, %v417_v43  ;;  %v613_v47 = vrot.slane %v612_v44, 4 }
 0x1c6   :  { %v419_v49 = vrot.slane %v418_v46, 2  ;;  %v614_v50 = vmax.f32 %v612_v44, %v613_v47  ;;  %v1724_v47 = vld [vmem:[%s2340_s10 + $0x8] sm:$0xff] }
 0x1c8   :  { %v420_v51 = vmax.f32 %v418_v46, %v419_v49  ;;  %v615_v52 = vrot.slane %v614_v50, 2 }
 0x1ca   :  { %v421_v54 = vrot.slane %v420_v51, 1  ;;  %v616_v55 = vmax.f32 %v614_v50, %v615_v52  ;;  %v2032_v50 = vmov 0.0|0.0  }
 0x1cc   :  { %v2163_v56 = vmax.f32 %v420_v51, %v421_v54  ;;  %v617_v57 = vrot.slane %v616_v55, 1  ;;  %v816_v54 = vld [vmem:[%s2336_s6] sm:$0xff] }
 0x1ce   :  { %vm423_vm8 = vcmp.eq.f32.partialorder %v408_v37, %v2163_v56  ;;  %v2167_v59 = vmax.f32 %v616_v55, %v617_v57  ;;  %v817_v55 = vld [vmem:[%s2336_s6 + $0x8] sm:$0xff] }
 0x1cf   :  { %v424_v60 = vsel %vm423_vm8, %v2161_v53, 6 }
 0x1d0   :  { %v425_v61 = vsel %vm415_vm5, %v424_v60, 2147483647  ;;  %vm619_vm9 = vcmp.eq.f32.partialorder %v408_v37, %v2167_v59  ;;  %vm620_vm10 = vcmp.eq.f32.partialorder %v409_v36, %v2167_v59  ;;  %v819_v60 = vld [vmem:[%s2336_s6 + $0x18] sm:$0xff] }
 0x1d1   :  { %v426_v62 = vrot.slane %v425_v61, 4  ;;  %v622_v63 = vsel %vm619_vm9, %v621_v58, 6  ;;  %v623_v0 = vsel %vm620_vm10, %v621_v58, 6  ;;  %v1960_v58 = vpack.c.bf16 %v817_v55, %v816_v54 }
 0x1d2   :  { %v624_v1 = vsel %vm608_vm6, %v622_v63, 2147483647  ;;  %v625_v2 = vsel %vm610_vm4, %v623_v0, 2147483647  ;;  %v824_v0 = vld [vmem:[%s2335_s5] sm:$0xf] }
 0x1d3   :  { %vm427_vm11 = vcmp.lt.s32.totalorder %v425_v61, %v426_v62  ;;  %vm626_vm12 = vcmp.lt.s32.totalorder %v624_v1, %v625_v2 }
 0x1d4   :  { %v428_v3 = vsel %vm427_vm11, %v425_v61, %v426_v62  ;;  %v627_v4 = vsel %vm626_vm12, %v624_v1, %v625_v2  ;;  %v821_v62 = vld [vmem:[%s2336_s6 + $0x28] sm:$0xff]  ;;  %v1731_v1 = vld [vmem:[%s2335_s5 + $0x4] sm:$0xf] }
 0x1d5   :  { %v429_v5 = vrot.slane %v428_v3, 2  ;;  %v628_v6 = vrot.slane %v627_v4, 4  ;;  %v1738_v2 = vld [vmem:[%s2335_s5 + $0x8] sm:$0xf] }
 0x1d7   :  { %vm430_vm13 = vcmp.lt.s32.totalorder %v428_v3, %v429_v5  ;;  %vm629_vm14 = vcmp.lt.s32.totalorder %v627_v4, %v628_v6 }
 0x1d8   :  { %v431_v7 = vsel %vm430_vm13, %v428_v3, %v429_v5  ;;  %v630_v8 = vsel %vm629_vm14, %v627_v4, %v628_v6  ;;  %v1733_v3 = vld [vmem:[%s2338_s8 + $0x4] sm:$0xf]  ;;  %v1729_v6 = vld [vmem:[%s2337_s7] ss:$0 sm:$0xff] }
 0x1d9   :  { %v432_v9 = vrot.slane %v431_v7, 1  ;;  %v631_v10 = vrot.slane %v630_v8, 2 }
 0x1db   :  { %vm433_vm15 = vcmp.lt.s32.totalorder %v431_v7, %v432_v9  ;;  %vm632_vm0 = vcmp.lt.s32.totalorder %v630_v8, %v631_v10 }
 0x1dc   :  { %v2175_v11 = vsel %vm433_vm15, %v431_v7, %v432_v9  ;;  %v633_v12 = vsel %vm632_vm0, %v630_v8, %v631_v10  ;;  %vm459_vm15 = vcmask 64512  }
 0x1dd   :  { %vm435_vm4 = vcmp.eq.s32.totalorder %v2161_v53, %v2175_v11  ;;  %v634_v13 = vrot.slane %v633_v12, 1 }
 0x1de   :  { %v436_v14 = vsel %vm435_vm4, -1.0, %v408_v37 }
 0x1df   :  { %v437_v15 = vsel %vm415_vm5, %v436_v14, -inf  ;;  %vm635_vm6 = vcmp.lt.s32.totalorder %v633_v12, %v634_v13 }
 0x1e0   :  { %v438_v16 = vrot.slane %v437_v15, 4  ;;  %v636_v17 = vsel %vm635_vm6, %v633_v12, %v634_v13  ;;  %vm831_vm6 = vcmask 392192   ;;  %v906_v12 = vld [vmem:[%s2338_s8] sm:$0xf] }
 0x1e1   :  { %vm637_vm7 = vcmp.eq.s32.totalorder %v2161_v53, %v636_v17 }
 0x1e2   :  { %v439_v18 = vmax.f32 %v437_v15, %v438_v16  ;;  %v645_v19 = vsel %vm637_vm7, -1.0, %v643_v45 }
 0x1e3   :  { %v646_v20 = vsel %vm415_vm5, %v645_v19, -inf }
 0x1e4   :  { %v440_v21 = vrot.slane %v439_v18, 2  ;;  %v647_v22 = vrot.slane %v646_v20, 4 }
 0x1e6   :  { %v441_v23 = vmax.f32 %v439_v18, %v440_v21  ;;  %v648_v24 = vmax.f32 %v646_v20, %v647_v22 }
 0x1e8   :  { %v442_v25 = vrot.slane %v441_v23, 1  ;;  %v649_v27 = vrot.slane %v648_v24, 2 }
 0x1ea   :  { %v443_v28 = vmax.f32 %v441_v23, %v442_v25  ;;  %v650_v29 = vmax.f32 %v648_v24, %v649_v27  ;;  %v1743_v25 = vld [vmem:[%s2339_s9] ss:$0 sm:$0xff] }
 0x1ec   :  { %vm444_vm8 = vcmp.eq.f32.partialorder %v436_v14, %v443_v28  ;;  %v651_v30 = vrot.slane %v650_v29, 1  ;;  %v1740_v14 = vld [vmem:[%s2338_s8 + $0x8] sm:$0xf] }
 0x1ed   :  { %v445_v31 = vsel %vm444_vm8, %v2161_v53, 6 }
 0x1ee   :  { %v446_v32 = vsel %vm415_vm5, %v445_v31, 2147483647  ;;  %v652_v33 = vmax.f32 %v650_v29, %v651_v30 }
 0x1ef   :  { %v447_v34 = vrot.slane %v446_v32, 4 }
 0x1f0   :  { %vm653_vm9 = vcmp.eq.f32.partialorder %v645_v19, %v652_v33  ;;  %v1744_v19 = vld [vmem:[%s2340_s10 + $0x10] sm:$0xff] }
 0x1f1   :  { %vm448_vm10 = vcmp.lt.s32.totalorder %v446_v32, %v447_v34  ;;  %v654_v35 = vsel %vm653_vm9, %v2161_v53, 6 }
 0x1f2   :  { %v449_v36 = vsel %vm448_vm10, %v446_v32, %v447_v34  ;;  %v655_v37 = vsel %vm415_vm5, %v654_v35, 2147483647 }
 0x1f3   :  { %v450_v38 = vrot.slane %v449_v36, 2  ;;  %v656_v39 = vrot.slane %v655_v37, 4 }
 0x1f5   :  { %vm451_vm11 = vcmp.lt.s32.totalorder %v449_v36, %v450_v38  ;;  %vm657_vm12 = vcmp.lt.s32.totalorder %v655_v37, %v656_v39 }
 0x1f6   :  { %v452_v40 = vsel %vm451_vm11, %v449_v36, %v450_v38  ;;  %v658_v41 = vsel %vm657_vm12, %v655_v37, %v656_v39 }
 0x1f7   :  { %v453_v42 = vrot.slane %v452_v40, 1  ;;  %v659_v43 = vrot.slane %v658_v41, 2 }
 0x1f9   :  { %vm454_vm13 = vcmp.lt.s32.totalorder %v452_v40, %v453_v42  ;;  %vm660_vm14 = vcmp.lt.s32.totalorder %v658_v41, %v659_v43 }
 0x1fa   :  { %v455_v44 = vsel %vm454_vm13, %v452_v40, %v453_v42  ;;  %v661_v45 = vsel %vm660_vm14, %v658_v41, %v659_v43 }
 0x1fb   :  { %vm456_vm0 = vcmp.lt.s32.totalorder %v2175_v11, %v455_v44  ;;  %v662_v46 = vrot.slane %v661_v45, 1  ;;  %v1505_v44 = vrot.slane %v2161_v53, 6 }
 0x1fc   :  { %v457_v48 = vsel %vm456_vm0, %v2163_v56, %v443_v28  ;;  %v458_v57 = vsel %vm456_vm0, %v443_v28, %v2163_v56  ;;  %v820_v56 = vld [vmem:[%s2336_s6 + $0x20] sm:$0xff] }
 0x1fd   :  { %1846 = vmatmul.mubr.msk.f32.vlgmr.msra.gmra.mrb[4].mxu1 %vm459_vm15, %v457_v48  ;;  %vm663_vm5 = vcmp.lt.s32.totalorder %v661_v45, %v662_v46  ;;  %v1966_v63 = vpack.c.bf16 %v821_v62, %v820_v56 }
 0x1fe   :  { %v664_v49 = vsel %vm663_vm5, %v661_v45, %v662_v46  ;;  %1849 = vmatpush3.msra.mxu1 %v1724_v47  ;;  %1850 = vmatprep.mubr.msk.f32.mxu1 %vm2031_vm3, %v2030_v26 }
 0x1ff   :  { %vm665_vm4 = vcmp.lt.s32.totalorder %v636_v17, %v664_v49  ;;  %1959 = vmatprep.subr.bf16.mxu1 %v2032_v50 }
 0x200   :  { %v666_v51 = vsel %vm665_vm4, %v2167_v59, %v652_v33  ;;  %v667_v52 = vsel %vm665_vm4, %v652_v33, %v2167_v59  ;;  %v818_v59 = vld [vmem:[%s2336_s6 + $0x10] sm:$0xff] }
 0x201   :  { %1856 = vmatmul.mubr.msk.f32.vlgmr.msra.gmra.mrb[4].mxu0 %vm459_vm15, %v666_v51  ;;  %v1963_v61 = vpack.c.bf16 %v819_v60, %v818_v59 }
 0x202   :  { %1859 = vmatpush3.msra.mxu0 %v1724_v47  ;;  %1860 = vmatprep.mubr.msk.f32.mxu0 %vm2031_vm3, %v2030_v26 }
 0x203   :  { %1968 = vmatprep.subr.bf16.mxu0 %v2032_v50 }
 0x205   :  { %1851 = vmatmul.mubr.msk.f32.vlgmr.msra.gmra.mrb[4].mxu1 %vm459_vm15, %v458_v57 }
 0x206   :  { %1961 = vmatpush3.bf16.msra.mxu1 %v1960_v58  ;;  %1875 = vmatprep.mubr.msk.f32.mxu1 %vm2031_vm3, %v2030_v26 }
 0x207   :  { %1962 = vmatprep.subr.bf16.mxu1 %v2032_v50 }
 0x209   :  { %1861 = vmatmul.mubr.msk.f32.vlgmr.msra.gmra.mrb[4].mxu0 %vm459_vm15, %v667_v52 }
 0x20a   :  { %1970 = vmatpush3.bf16.msra.mxu0 %v1960_v58  ;;  %1964 = vmatpush3.bf16.msra.mxu1 %v1963_v61 }
 0x20b   :  { %1971 = vmatprep.subr.bf16.mxu0 %v2032_v50  ;;  %1890 = vmatprep.mubr.msk.f32.mxu0 %vm2031_vm3, %v2030_v26 }
 0x20c   :  { %1965 = vmatprep.subr.bf16.mxu1 %v2032_v50 }
 0x20e   :  { %1973 = vmatpush3.bf16.msra.mxu0 %v1963_v61  ;;  %1967 = vmatpush3.bf16.msra.mxu1 %v1966_v63 }
 0x20f   :  { %1974 = vmatprep.subr.bf16.mxu0 %v2032_v50  ;;  %1893 = vmatprep.subr.mxu1 %v2030_v26 }
 0x211   :  { %1876 = vmatmul.mubr.msk.f32.vlgmr.msra.gmra.mrb[6].mxu1 %vm831_vm6, %v824_v0 }
 0x212   :  { %1976 = vmatpush3.bf16.msra.mxu0 %v1966_v63  ;;  %1895 = vmatprep.mubr.msk.f32.mxu1 %vm2031_vm3, %v2030_v26 }
 0x213   :  { %1977 = vmatprep.subr.bf16.mxu0 %v2032_v50  ;;  %1894 = vmatpush3.msk.msra.mxu1 %vm237_vm1, %v1733_v3 }
 0x214   :  { %1898 = vmatprep.subr.mxu1 %v2030_v26 }
 0x215   :  { %1891 = vmatmul.mubr.msk.f32.vlgmr.msra.gmra.mrb[6].mxu0 %vm831_vm6, %v1731_v1 }
 0x216   :  { %1979 = vmatpush3.bf16.msra.mxu0 %v1960_v58  ;;  %1915 = vmatprep.mubr.msk.f32.mxu0 %vm2031_vm3, %v2030_v26 }
 0x217   :  { %1980 = vmatprep.subr.bf16.mxu0 %v2032_v50 }
 0x21a   :  { %1982 = vmatpush3.bf16.msra.mxu0 %v1963_v61 }
 0x21b   :  { %1983 = vmatprep.subr.bf16.mxu0 %v2032_v50 }
 0x21e   :  { %1985 = vmatpush3.bf16.msra.mxu0 %v1966_v63 }
 0x21f   :  { %1933 = vmatprep.subr.mxu0 %v2030_v26 }
 0x221   :  { %1916 = vmatmul.mubr.msk.f32.vlgmr.msra.gmra.mrb[8].mxu0 %vm831_vm6, %v1738_v2 }
 0x222   :  { %1935 = vmatprep.mubr.msk.f32.mxu0 %vm2031_vm3, %v2030_v26  ;;  %1934 = vmatpush3.msra.mxu0 %v1744_v19 }
 0x223   :  { %1938 = vmatprep.subr.mxu0 %v2030_v26 }
 0x2e4   :  { %v901_v4 = vpop.f32.mrb[6].mxu1 }
 0x2e5   :  { %v1877_v5 = vpop.f32.mrb[7].mxu1  ;;  %v902_v10 = vadd.f32 %v1729_v6, %v901_v4 }
 0x2e7   :  { %v905_v13 = vmax.f32 %v902_v10, 0.0 }
 0x2e8   :  { %v978_v7 = vpop.f32.mrb[6].mxu0 }
 0x2e9   :  { %v979_v8 = vadd.f32 %v1729_v6, %v978_v7  ;;  %v1892_v9 = vpop.f32.mrb[7].mxu0 }
 0x2eb   :  { %v982_v11 = vmax.f32 %v979_v8, 0.0 }
 0x2ed   :  { %1896 = vmatmul.mubr.msk.f32.vlgmr.msra.gmra.mrb[8].mxu1 %vm230_vm2, %v982_v11 }
 0x2ee   :  { %1899 = vmatpush3.msk.msra.mxu1 %vm237_vm1, %v906_v12  ;;  %1900 = vmatprep.mubr.msk.f32.mxu1 %vm2031_vm3, %v2030_v26 }
 0x2ef   :  { %1918 = vmatprep.subr.mxu1 %v2030_v26 }
 0x2f1   :  { %1901 = vmatmul.mubr.msk.f32.vlgmr.msra.gmra.mrb[10].mxu1 %vm230_vm2, %v905_v13 }
 0x2f2   :  { %1919 = vmatpush3.msk.msra.mxu1 %vm237_vm1, %v1740_v14  ;;  %1920 = vmatprep.mubr.msk.f32.mxu1 %vm2031_vm3, %v2030_v26  ;;  %vm1304_vm1 = vcmask 58368  }
 0x2f3   :  { %1923 = vmatprep.subr.mxu1 %v2030_v26 }
 0x2f4   :  { %v1208_v15 = vpop.f32.mrb[8].mxu0 }
 0x2f5   :  { %v1209_v16 = vadd.f32 %v1729_v6, %v1208_v15  ;;  %v1917_v17 = vpop.f32.mrb[9].mxu0 }
 0x2f7   :  { %v1212_v18 = vmax.f32 %v1209_v16, 0.0 }
 0x2f9   :  { %1921 = vmatmul.mubr.msk.f32.vlgmr.msra.gmra.mrb[12].mxu1 %vm230_vm2, %v1212_v18  ;;  %vm1496_vm2 = vcmask 60418  }
 0x2fa   :  { %1925 = vmatprep.mubr.msk.f32.mxu1 %vm2031_vm3, %v2030_v26  ;;  %1924 = vmatpush3.msra.mxu1 %v1744_v19 }
 0x2fb   :  { %1928 = vmatprep.subr.mxu1 %v2030_v26 }
 0x3c0   :  { %v1057_v20 = vpop.f32.mrb[8].mxu1 }
 0x3c1   :  { %v1897_v21 = vpop.f32.mrb[9].mxu1 }
 0x3c4   :  { %v1133_v22 = vpop.f32.mrb[10].mxu1 }
 0x3c5   :  { %v1134_v23 = vadd.f32 %v1133_v22, %v1057_v20  ;;  %v1902_v24 = vpop.f32.mrb[11].mxu1 }
 0x3cc   :  { %v1287_v27 = vpop.f32.mrb[12].mxu1 }
 0x3cd   :  { %v1291_v28 = vadd.f32 %v1287_v27, %v1134_v23  ;;  %v1922_v29 = vpop.f32.mrb[13].mxu1 }
 0x3cf   :  { %v1298_v30 = vadd.f32 %v1743_v25, %v1291_v28 }
 0x3d1   :  { %v1299_v31 = vmax.f32 %v1298_v30, 0.0 }
 0x3d3   :  { %v1305_v32 = vsel %vm1304_vm1, %v1299_v31, -inf  ;;  %v1497_v33 = vsel %vm1496_vm2, %v1299_v31, -inf  ;;  %v1519_v0 = vrot.slane %v1299_v31, 2 }
 0x3d4   :  { %v1306_v34 = vrot.slane %v1305_v32, 4  ;;  %v1498_v35 = vrot.slane %v1497_v33, 4 }
 0x3d6   :  { %v1307_v36 = vmax.f32 %v1305_v32, %v1306_v34  ;;  %v1499_v37 = vmax.f32 %v1497_v33, %v1498_v35  ;;  %v1745_v33 = vld [vmem:[%s2340_s10 + $0x18] sm:$0xff] }
 0x3d8   :  { %v1308_v38 = vrot.slane %v1307_v36, 2  ;;  %v1500_v39 = vrot.slane %v1499_v37, 2 }
 0x3da   :  { %v1309_v40 = vmax.f32 %v1307_v36, %v1308_v38  ;;  %v1501_v41 = vmax.f32 %v1499_v37, %v1500_v39  ;;  %v42_v38 = vld [vmem:[%s2341_s11] sm:$0x1] }
 0x3dc   :  { %v1310_v42 = vrot.slane %v1309_v40, 1  ;;  %v1502_v43 = vrot.slane %v1501_v41, 1 }
 0x3de   :  { %v2283_v45 = vmax.f32 %v1309_v40, %v1310_v42  ;;  %v2285_v46 = vmax.f32 %v1501_v41, %v1502_v43 }
 0x3e0   :  { %vm1312_vm7 = vcmp.eq.f32.partialorder %v1299_v31, %v2283_v45  ;;  %vm1504_vm8 = vcmp.eq.f32.partialorder %v1299_v31, %v2285_v46 }
 0x3e1   :  { %v1313_v47 = vsel %vm1312_vm7, %v2161_v53, 2  ;;  %v1506_v48 = vsel %vm1504_vm8, %v1505_v44, 2 }
 0x3e2   :  { %v1314_v49 = vsel %vm1304_vm1, %v1313_v47, 2147483647  ;;  %v1507_v50 = vsel %vm1496_vm2, %v1506_v48, 2147483647 }
 0x3e3   :  { %v1315_v51 = vrot.slane %v1314_v49, 4  ;;  %v1508_v52 = vrot.slane %v1507_v50, 4 }
 0x3e5   :  { %vm1316_vm9 = vcmp.lt.s32.totalorder %v1314_v49, %v1315_v51  ;;  %vm1509_vm10 = vcmp.lt.s32.totalorder %v1507_v50, %v1508_v52 }
 0x3e6   :  { %v1317_v54 = vsel %vm1316_vm9, %v1314_v49, %v1315_v51  ;;  %v1510_v55 = vsel %vm1509_vm10, %v1507_v50, %v1508_v52 }
 0x3e7   :  { %v1318_v57 = vrot.slane %v1317_v54, 2  ;;  %v1511_v58 = vrot.slane %v1510_v55, 2 }
 0x3e9   :  { %vm1319_vm11 = vcmp.lt.s32.totalorder %v1317_v54, %v1318_v57  ;;  %vm1512_vm12 = vcmp.lt.s32.totalorder %v1510_v55, %v1511_v58 }
 0x3ea   :  { %v1320_v59 = vsel %vm1319_vm11, %v1317_v54, %v1318_v57  ;;  %v1513_v60 = vsel %vm1512_vm12, %v1510_v55, %v1511_v58 }
 0x3eb   :  { %v1321_v61 = vrot.slane %v1320_v59, 1  ;;  %v1514_v56 = vrot.slane %v1513_v60, 1 }
 0x3ed   :  { %vm1322_vm13 = vcmp.lt.s32.totalorder %v1320_v59, %v1321_v61  ;;  %vm1515_vm14 = vcmp.lt.s32.totalorder %v1513_v60, %v1514_v56 }
 0x3ee   :  { %v1323_v62 = vsel %vm1322_vm13, %v1320_v59, %v1321_v61  ;;  %v1516_v63 = vsel %vm1515_vm14, %v1513_v60, %v1514_v56  ;;  %vm1692_vm13 = vcmask 57344  }
 0x3ef   :  { %vm1324_vm0 = vcmp.eq.s32.totalorder %v2161_v53, %v1323_v62  ;;  %vm1517_vm5 = vcmp.eq.s32.totalorder %v2161_v53, %v1516_v63 }
 0x3f0   :  { %v1325_v1 = vsel %vm1324_vm0, -1.0, %v1299_v31  ;;  %v1521_v2 = vsel %vm1517_vm5, -1.0, %v1519_v0 }
 0x3f1   :  { %v1326_v3 = vsel %vm1304_vm1, %v1325_v1, -inf  ;;  %v1522_v4 = vsel %vm1304_vm1, %v1521_v2, -inf }
 0x3f2   :  { %v1327_v5 = vrot.slane %v1326_v3, 4  ;;  %v1523_v6 = vrot.slane %v1522_v4, 4 }
 0x3f4   :  { %v1328_v7 = vmax.f32 %v1326_v3, %v1327_v5  ;;  %v1524_v8 = vmax.f32 %v1522_v4, %v1523_v6 }
 0x3f6   :  { %v1329_v9 = vrot.slane %v1328_v7, 2  ;;  %v1525_v10 = vrot.slane %v1524_v8, 2 }
 0x3f8   :  { %v1330_v11 = vmax.f32 %v1328_v7, %v1329_v9  ;;  %v1526_v12 = vmax.f32 %v1524_v8, %v1525_v10 }
 0x3fa   :  { %v1331_v13 = vrot.slane %v1330_v11, 1  ;;  %v1527_v14 = vrot.slane %v1526_v12, 1 }
 0x3fc   :  { %v1332_v15 = vmax.f32 %v1330_v11, %v1331_v13  ;;  %v1528_v16 = vmax.f32 %v1526_v12, %v1527_v14 }
 0x3fe   :  { %vm1333_vm4 = vcmp.eq.f32.partialorder %v1325_v1, %v1332_v15  ;;  %vm1529_vm6 = vcmp.eq.f32.partialorder %v1521_v2, %v1528_v16 }
 0x3ff   :  { %v1334_v17 = vsel %vm1333_vm4, %v2161_v53, 2  ;;  %v1530_v18 = vsel %vm1529_vm6, %v2161_v53, 2 }
 0x400   :  { %v1335_v19 = vsel %vm1304_vm1, %v1334_v17, 2147483647  ;;  %v1531_v20 = vsel %vm1304_vm1, %v1530_v18, 2147483647 }
 0x401   :  { %v1336_v21 = vrot.slane %v1335_v19, 4  ;;  %v1532_v22 = vrot.slane %v1531_v20, 4 }
 0x403   :  { %vm1337_vm2 = vcmp.lt.s32.totalorder %v1335_v19, %v1336_v21  ;;  %vm1533_vm7 = vcmp.lt.s32.totalorder %v1531_v20, %v1532_v22 }
 0x404   :  { %v1338_v23 = vsel %vm1337_vm2, %v1335_v19, %v1336_v21  ;;  %v1534_v24 = vsel %vm1533_vm7, %v1531_v20, %v1532_v22 }
 0x405   :  { %v1339_v25 = vrot.slane %v1338_v23, 2  ;;  %v1535_v27 = vrot.slane %v1534_v24, 2 }
 0x407   :  { %vm1340_vm8 = vcmp.lt.s32.totalorder %v1338_v23, %v1339_v25  ;;  %vm1536_vm9 = vcmp.lt.s32.totalorder %v1534_v24, %v1535_v27 }
 0x408   :  { %v1341_v28 = vsel %vm1340_vm8, %v1338_v23, %v1339_v25  ;;  %v1537_v29 = vsel %vm1536_vm9, %v1534_v24, %v1535_v27 }
 0x409   :  { %v1342_v30 = vrot.slane %v1341_v28, 1  ;;  %v1538_v31 = vrot.slane %v1537_v29, 1 }
 0x40b   :  { %vm1343_vm10 = vcmp.lt.s32.totalorder %v1341_v28, %v1342_v30  ;;  %vm1539_vm11 = vcmp.lt.s32.totalorder %v1537_v29, %v1538_v31 }
 0x40c   :  { %v1344_v53 = vsel %vm1343_vm10, %v1341_v28, %v1342_v30  ;;  %v1540_v32 = vsel %vm1539_vm11, %v1537_v29, %v1538_v31 }
 0x40d   :  { %vm1345_vm12 = vcmp.lt.s32.totalorder %v1323_v62, %v1344_v53  ;;  %vm1541_vm1 = vcmp.lt.s32.totalorder %v1516_v63, %v1540_v32 }
 0x40e   :  { %v1346_v34 = vsel %vm1345_vm12, %v2283_v45, %v1332_v15  ;;  %v1542_v35 = vsel %vm1541_vm1, %v2285_v46, %v1528_v16  ;;  %v1347_v36 = vsel %vm1345_vm12, %v1332_v15, %v2283_v45  ;;  %v1543_v37 = vsel %vm1541_vm1, %v1528_v16, %v2285_v46 }
 0x40f   :  { %1926 = vmatmul.mubr.msk.f32.vlgmr.msra.gmra.mrb[4].mxu1 %vm459_vm15, %v1346_v34  ;;  %1936 = vmatmul.mubr.msk.f32.vlgmr.msra.gmra.mrb[4].mxu0 %vm459_vm15, %v1542_v35 }
 0x410   :  { %1929 = vmatpush3.msra.mxu1 %v1745_v33  ;;  %1939 = vmatpush3.msra.mxu0 %v1745_v33 }
 0x411   :  { %1930 = vmatprep.mubr.msk.f32.mxu1 %vm2031_vm3, %v2030_v26  ;;  %1940 = vmatprep.mubr.msk.f32.mxu0 %vm2031_vm3, %v2030_v26 }
 0x417   :  { %1931 = vmatmul.mubr.msk.f32.vlgmr.msra.gmra.mrb[4].mxu1 %vm459_vm15, %v1347_v36  ;;  %1941 = vmatmul.mubr.msk.f32.vlgmr.msra.gmra.mrb[4].mxu0 %vm459_vm15, %v1543_v37 }
 0x4ea   :  { %v1491_v39 = vpop.f32.mrb[4].mxu1  ;;  %v1687_v40 = vpop.f32.mrb[4].mxu0 }
 0x4eb   :  { %v1988_v41 = vadd.f32 %v1491_v39, %v42_v38  ;;  %v1989_v42 = vadd.f32 %v1687_v40, %v42_v38  ;;  %v1932_v26 = vpop.f32.mrb[5].mxu1  ;;  %v1942_v43 = vpop.f32.mrb[5].mxu0 }
 0x4ed   :  { %1693 = vst.msk [vmem:[#allocation2] sm:$0x1] %vm1692_vm13, %v1988_v41  ;;  %1694 = vst.msk [vmem:[#allocation2 + $0x1] sm:$0x1] %vm1692_vm13, %v1989_v42 }
 0x4ee   :  { %2017 = shalt.err (!%p2014_p4)
}
 0x4ef   :  { %s2018_s16 = scalar_lea.hbm %s2342_s12, 32 }
 0x4f0   :  { %p2019_p5 = scmp.ne.s32.totalorder %s2342_s12, %s2018_s16  ;;  %p2022_p6 = scmp.lt.u32.totalorder %s2018_s16, %s2342_s12 }
 0x4f2   :  { %p2024_p7 = pnand %p2022_p6, %p2019_p5 }
 0x4f4   :  { %2027 = shalt.err (!%p2024_p7)
}
 0x4f5   :  { %1704 = dma.vmem_to_hbm [thread:$0]  %s1702_s14, 32, %s2342_s12, [#allocation3]  }
 0x4f6   :  { %2028 = dma.done.wait [#allocation3], 32  }
 0x4f7   :  { %2029 = vsyncadd [#allocation3], 4294967264 }
 0x4f8   :  { %1708 = vsyncpa [#allocation3], 1 }

</bundles_post_ra>
